<compile_context>
chip_gen: v7x
topology: tpu7x:2x2x1
jax: 0.10.0
libtpu: 0.0.40
codegen_flags: <defaults>
</compile_context>

<pallas_src>
import functools
import math

import jax
import jax.numpy as jnp
from jax.experimental import pallas as pl
from jax.experimental.pallas import tpu as pltpu


def _round_up(x, m):
    return ((x + m - 1) // m) * m


def _cdiv(a, b):
    return -(-a // b)


def _detect_core_splits():
    """2-way row split only pays off on 2-TensorCore chips (v7x); 1 elsewhere."""
    try:
        dev = jax.devices()[0]
        kind = (getattr(dev, "device_kind", "") or "").lower()
        if "v7" in kind:
            return 2
        nc = getattr(dev, "num_cores", None)
        if isinstance(nc, int) and nc > 1:
            return min(int(nc), 2)
    except Exception:
        pass
    return 1


def _mse_partial_kernel(x_ref, t_ref, partial_ref, acc_ref, *,
                        block_rows, lane, rows, steps, apply_mask):
    """Accumulate sum((x - t)^2) over this core's row range into partial_ref[0, 0]."""
    c = pl.program_id(0)   # core-split axis ("parallel")
    i = pl.program_id(1)   # reduction axis ("arbitrary")

    @pl.when(i == 0)
    def _():
        acc_ref[...] = jnp.zeros_like(acc_ref)

    d = x_ref[...].astype(jnp.float32) - t_ref[...].astype(jnp.float32)

    if apply_mask:
        # Logical (unclamped) first row of this block.  Out-of-range rows of the
        # edge / duplicated blocks are zeroed BEFORE squaring, so any garbage in
        # the padded region (including NaN/Inf) contributes exactly zero.
        row0 = (c * steps + i) * block_rows
        gid = row0 + jax.lax.broadcasted_iota(jnp.int32, (block_rows, 1), 0)
        d = jnp.where(gid < rows, d, jnp.float32(0.0))

    sq = d * d

    if block_rows % 8 == 0:
        # Pure VPU accumulate into a few vregs: no full-block accumulator and
        # no per-step XLU reduce.
        acc_ref[...] += jnp.sum(sq.reshape(block_rows // 8, 8, lane), axis=0)
    else:
        # Tiny single-block fallback (rows < 8): remaining acc rows stay zero.
        acc_ref[0:block_rows, :] += sq

    @pl.when(i == pl.num_programs(1) - 1)
    def _():
        partial_ref[0, 0] = jnp.sum(acc_ref[...])   # one small reduce per core


def content_loss_forward(x, target, *, max_block_rows=1024, target_steps=4,
                         num_core_splits=None):
    """Returns (input_passthrough, loss) matching ContentLoss.forward.

    x, target: arrays of identical shape (e.g. NCHW conv features) and dtype.
    """
    assert x.shape == target.shape, "input and target must have the same shape"
    total = int(math.prod(x.shape))
    itemsize = jnp.dtype(x.dtype).itemsize

    if num_core_splits is None:
        num_core_splits = _detect_core_splits()
    num_core_splits = max(1, int(num_core_splits))

    # ---- Copy-free 2-D view (reshapes of contiguous arrays are free). ----
    lane = None
    for cand in (512, 256, 128):
        if total % cand == 0 and total // cand >= 8:
            lane = cand
            break
    if lane is None:
        for cand in (512, 256, 128):
            if total % cand == 0:
                lane = cand
                break
    if lane is not None:
        rows = total // lane
    elif x.ndim >= 2:
        lane = x.shape[-1] * x.shape[-2]      # e.g. H*W for NCHW features
        rows = total // lane
    else:
        lane = total
        rows = 1

    x2 = x.reshape(rows, lane)
    t2 = target.reshape(rows, lane)

    # ---- Row blocking: ~target_steps reduction steps per core. ----
    if rows < 8:
        num_core_splits = 1
        block_rows = rows          # full-extent block
        nblocks = 1
        steps = 1
    else:
        unit = 16 if rows >= 16 else 8         # multiple of 16 keeps bf16 sublanes packed
        cap = (rows // unit) * unit            # never exceed the array's row extent
        per_core = _cdiv(rows, num_core_splits)
        want = _round_up(max(1, _cdiv(per_core, target_steps)), unit)
        block_rows = min(want, max_block_rows, cap)
        nblocks = _cdiv(rows, block_rows)
        num_core_splits = max(1, min(num_core_splits, nblocks))
        steps = _cdiv(nblocks, num_core_splits)

    apply_mask = (num_core_splits * steps * block_rows != rows)

    def in_map(c, i):
        # Clamp so duplicated trailing blocks of the last core never issue an
        # out-of-bounds DMA; their contribution is masked to zero in-kernel.
        return (jnp.minimum(c * steps + i, nblocks - 1), 0)

    kernel = functools.partial(
        _mse_partial_kernel,
        block_rows=block_rows, lane=lane, rows=rows, steps=steps,
        apply_mask=apply_mask)

    # Explicit scoped-VMEM budget: 2 inputs x 2 pipeline buffers + f32
    # temporaries + tiny (8, lane) accumulator, with headroom.  Safe on every
    # generation (v5e/v6e 128 MiB physical, v7x 64 MiB physical).
    block_in_bytes = block_rows * lane * itemsize
    vmem_needed = 4 * block_in_bytes + 3 * block_rows * lane * 4 + 8 * lane * 4
    vmem_limit = int(min(48 * 2**20, max(32 * 2**20, vmem_needed + (4 << 20))))

    partials = pl.pallas_call(
        kernel,
        out_shape=jax.ShapeDtypeStruct((num_core_splits, 1), jnp.float32),
        grid_spec=pltpu.PrefetchScalarGridSpec(
            num_scalar_prefetch=0,
            grid=(num_core_splits, steps),
            in_specs=[
                pl.BlockSpec((block_rows, lane), in_map),
                pl.BlockSpec((block_rows, lane), in_map),
            ],
            out_specs=pl.BlockSpec(
                (1, 1), lambda c, i: (c, 0), memory_space=pltpu.SMEM
            ),
            scratch_shapes=[pltpu.VMEM((8, lane), jnp.float32)],
        ),
        compiler_params=pltpu.CompilerParams(
            dimension_semantics=("parallel", "arbitrary"),
            vmem_limit_bytes=vmem_limit,
        ),
        cost_estimate=pl.CostEstimate(
            flops=3 * total,
            transcendentals=0,
            bytes_accessed=2 * total * itemsize + num_core_splits * 4,
        ),
    )(x2, t2)

    loss = jnp.sum(partials) * jnp.float32(1.0 / float(total))

    # ContentLoss.forward returns the input unchanged (loss is a side value).
    return x, loss


if __name__ == "__main__":
    key = jax.random.PRNGKey(0)
    kx, kt = jax.random.split(key)

    # Small NCHW shapes consistent with the module's conv-feature inputs.
    shape = (2, 4, 16, 16)
    x = jax.random.normal(kx, shape, dtype=jnp.float32)
    # "target_feature.detach()" — a fixed, deterministic feature map.
    target = jax.random.normal(kt, shape, dtype=jnp.float32)

    out, loss = jax.block_until_ready(content_loss_forward(x, target))
    ref_loss = jnp.mean((x - target) ** 2)
    assert jnp.allclose(loss, ref_loss, rtol=1e-5, atol=1e-6), (loss, ref_loss)
    assert jnp.array_equal(out, x)          # forward returns input unchanged

    # Ragged shape: exercises the fused trailing-dims view (no padding, no copy).
    kx2, kt2 = jax.random.split(kt)
    shape2 = (2, 3, 17, 13)
    xr = jax.random.normal(kx2, shape2, dtype=jnp.float32)
    tr = jax.random.normal(kt2, shape2, dtype=jnp.float32)
    out2, loss2 = jax.block_until_ready(content_loss_forward(xr, tr))
    ref2 = jnp.mean((xr - tr) ** 2)
    assert jnp.allclose(loss2, ref2, rtol=1e-5, atol=1e-6), (loss2, ref2)
    assert jnp.array_equal(out2, xr)

    # Larger shape: exercises the multi-step grid with a masked edge block.
    kx3, kt3 = jax.random.split(kt2)
    shape3 = (2, 8, 24, 24)
    xl = jax.random.normal(kx3, shape3, dtype=jnp.float32)
    tl = jax.random.normal(kt3, shape3, dtype=jnp.float32)
    out3, loss3 = jax.block_until_ready(content_loss_forward(xl, tl))
    ref3 = jnp.mean((xl - tl) ** 2)
    assert jnp.allclose(loss3, ref3, rtol=1e-5, atol=1e-6), (loss3, ref3)
    assert jnp.array_equal(out3, xl)

    print("KERNEL_OK")
</pallas_src>

<mosaic_0001>
module attributes {stable_mosaic.version = 11 : i64} {
  func.func @_mse_partial_kernel(%arg0: i32, %arg1: i32, %arg2: memref<8x256xf32, #tpu.memory_space<vmem>>, %arg3: memref<8x256xf32, #tpu.memory_space<vmem>>, %arg4: memref<1x1xf32, #tpu.memory_space<smem>>, %arg5: memref<8x256xf32, #tpu.memory_space<vmem>>) attributes {dimension_semantics = [#tpu.dimension_semantics<parallel>, #tpu.dimension_semantics<arbitrary>], iteration_bounds = array<i64: 1, 1>, scalar_prefetch = 0 : i64, scratch_operands = 1 : i64, tpu.core_type = #tpu.core_type<tc>, window_params = [{transform_indices = @transform_0, window_bounds = array<i64: 8, 256>}, {transform_indices = @transform_1, window_bounds = array<i64: 8, 256>}, {transform_indices = @transform_2, window_bounds = array<i64: 1, 1>}]} {
    %c0_i32 = arith.constant 0 : i32
    %0 = arith.cmpi eq, %arg1, %c0_i32 : i32
    %1 = arith.extui %0 : i1 to i32
    %c0_i32_0 = arith.constant 0 : i32
    %2 = arith.cmpi ne, %1, %c0_i32_0 : i32
    scf.if %2 {
      %cst_10 = arith.constant 0.000000e+00 : f32
      %15 = vector.broadcast %cst_10 : f32 to vector<8x256xf32>
      %c0_11 = arith.constant 0 : index
      %c0_12 = arith.constant 0 : index
      %16 = vector.load %arg5[%c0_11, %c0_12] : memref<8x256xf32, #tpu.memory_space<vmem>>, vector<8x256xf32>
      tpu.vector_store %arg5[%c0_11, %c0_12], %15 {strides = array<i32>} : memref<8x256xf32, #tpu.memory_space<vmem>>, vector<8x256xf32>,
    } else {
    }
    %c0 = arith.constant 0 : index
    %c0_1 = arith.constant 0 : index
    %3 = vector.load %arg2[%c0, %c0_1] : memref<8x256xf32, #tpu.memory_space<vmem>>, vector<8x256xf32>
    %c0_2 = arith.constant 0 : index
    %c0_3 = arith.constant 0 : index
    %4 = vector.load %arg3[%c0_2, %c0_3] : memref<8x256xf32, #tpu.memory_space<vmem>>, vector<8x256xf32>
    %5 = arith.subf %3, %4 : vector<8x256xf32>
    %6 = arith.mulf %5, %5 : vector<8x256xf32>
    %c0_4 = arith.constant 0 : index
    %c0_5 = arith.constant 0 : index
    %7 = vector.load %arg5[%c0_4, %c0_5] : memref<8x256xf32, #tpu.memory_space<vmem>>, vector<8x256xf32>
    %8 = vector.shape_cast %6 : vector<8x256xf32> to vector<1x8x256xf32>
    %cst = arith.constant dense<0.000000e+00> : vector<8x256xf32>
    %9 = vector.multi_reduction <add>, %8, %cst [0] : vector<1x8x256xf32> to vector<8x256xf32>
    %10 = arith.addf %7, %9 : vector<8x256xf32>
    %c0_6 = arith.constant 0 : index
    %c0_7 = arith.constant 0 : index
    %11 = vector.load %arg5[%c0_6, %c0_7] : memref<8x256xf32, #tpu.memory_space<vmem>>, vector<8x256xf32>
    tpu.vector_store %arg5[%c0_6, %c0_7], %10 {strides = array<i32>} : memref<8x256xf32, #tpu.memory_space<vmem>>, vector<8x256xf32>,
    %c0_i32_8 = arith.constant 0 : i32
    %12 = arith.cmpi eq, %arg1, %c0_i32_8 : i32
    %13 = arith.extui %12 : i1 to i32
    %c0_i32_9 = arith.constant 0 : i32
    %14 = arith.cmpi ne, %13, %c0_i32_9 : i32
    scf.if %14 {
      %c0_10 = arith.constant 0 : index
      %c0_11 = arith.constant 0 : index
      %15 = vector.load %arg5[%c0_10, %c0_11] : memref<8x256xf32, #tpu.memory_space<vmem>>, vector<8x256xf32>
      %16 = vector.shape_cast %15 : vector<8x256xf32> to vector<1x8x256xf32>
      %cst_12 = arith.constant dense<0.000000e+00> : vector<1xf32>
      %17 = vector.multi_reduction <add>, %16, %cst_12 [1, 2] : vector<1x8x256xf32> to vector<1xf32>
      %18 = vector.shape_cast %17 : vector<1xf32> to vector<1x1x1xf32>
      %19 = vector.extract %18[0, 0, 0] : f32 from vector<1x1x1xf32>
      %c0_13 = arith.constant 0 : index
      %c0_14 = arith.constant 0 : index
      %20 = memref.load %arg4[%c0_13, %c0_14] : memref<1x1xf32, #tpu.memory_space<smem>>
      memref.store %19, %arg4[%c0_13, %c0_14] : memref<1x1xf32, #tpu.memory_space<smem>>
    } else {
    }
    return
  }
  func.func @transform_0(%arg0: i32, %arg1: i32) -> (i32, i32) {
    %c1_i32 = arith.constant 1 : i32
    %0 = arith.muli %arg0, %c1_i32 : i32
    %1 = arith.addi %0, %arg1 : i32
    %c0_i32 = arith.constant 0 : i32
    %2 = arith.minsi %1, %c0_i32 : i32
    %c0_i32_0 = arith.constant 0 : i32
    %c0_i32_1 = arith.constant 0 : i32
    return %2, %c0_i32_0 : i32, i32
  }
  func.func @transform_1(%arg0: i32, %arg1: i32) -> (i32, i32) {
    %c1_i32 = arith.constant 1 : i32
    %0 = arith.muli %arg0, %c1_i32 : i32
    %1 = arith.addi %0, %arg1 : i32
    %c0_i32 = arith.constant 0 : i32
    %2 = arith.minsi %1, %c0_i32 : i32
    %c0_i32_0 = arith.constant 0 : i32
    %c0_i32_1 = arith.constant 0 : i32
    return %2, %c0_i32_0 : i32, i32
  }
  func.func @transform_2(%arg0: i32, %arg1: i32) -> (i32, i32) {
    %c0_i32 = arith.constant 0 : i32
    %c0_i32_0 = arith.constant 0 : i32
    return %arg0, %c0_i32 : i32, i32
  }
}

</mosaic_0001>

<bundles_post_ra>
// kernel: tpu_custom_call.1
= control target key start
LH: loop header
LB: loop body
LE: loop exit
PB: predicated region body
PF: predicated region fallthrough
CT: control target
= control target key end

     0   :  { %7 = vsyncpa [#allocation4], 0  ;;  %s231_s0 = inlined_call_operand.hbm [shape: f32[8,256], index: 0, kind: input, shape index: {}]   ;;  %s232_s1 = inlined_call_operand.hbm [shape: f32[8,256], index: 1, kind: input, shape index: {}]   ;;  %s233_s2 = inlined_call_operand.hbm [shape: f32[1,1], index: 2, kind: output, shape index: {}]  }
   0x1   :  { %8 = vsyncpa [#allocation7], 0 }
   0x2   :  { %9 = vsyncpa [#allocation5], 0  ;;  %s177_s9 = smov [#allocation3]   ;;  %s178_s11 = smov [#allocation6]  }
   0x3   :  { %s22_s10 = sshll.u32 %s177_s9, 4  ;;  %s38_s12 = sshll.u32 %s178_s11, 4  ;;  %s23_s10 = int_to_ptr.vmem [resolvable:$true] %s22_s10  ;;  %s39_s12 = int_to_ptr.vmem [resolvable:$true] %s38_s12 }
   0x4   :  { %s117_s15 = scalar_lea.hbm %s231_s0, 256 }
   0x5   :  { %p118_p0 = scmp.ne.s32.totalorder %s231_s0, %s117_s15  ;;  %p121_p1 = scmp.lt.u32.totalorder %s117_s15, %s231_s0 }
   0x7   :  { %p123_p2 = pnand %p121_p1, %p118_p0 }
   0x9   :  { %126 = shalt.err (!%p123_p2)
}
   0xa   :  { %s127_s20 = scalar_lea.vmem %s23_s10, 256  ;;  %p132_p4 = scmp.lt.s32.totalorder %s23_s10, %s23_s10 }
   0xb   :  { %p128_p3 = scmp.ne.s32.totalorder %s23_s10, %s127_s20  ;;  %p133_p5 = scmp.lt.s32.totalorder %s127_s20, %s127_s20 }
   0xd   :  { %p134_p6 = por %p133_p5, %p132_p4 }
   0xf   :  { %p135_p7 = pnand %p134_p6, %p128_p3 }
  0x11   :  { %138 = shalt.err (!%p135_p7)
}
  0x12   :  { %25 = dma.hbm_to_vmem [thread:$0]  %s231_s0, 256, %s23_s10, [#allocation4]  }
  0x13   :  { %s139_s25 = scalar_lea.hbm %s232_s1, 256 }
  0x14   :  { %p140_p8 = scmp.ne.s32.totalorder %s232_s1, %s139_s25  ;;  %p143_p9 = scmp.lt.u32.totalorder %s139_s25, %s232_s1 }
  0x16   :  { %p145_p10 = pnand %p143_p9, %p140_p8 }
  0x18   :  { %148 = shalt.err (!%p145_p10)
}
  0x19   :  { %s149_s30 = scalar_lea.vmem %s39_s12, 256  ;;  %p154_p12 = scmp.lt.s32.totalorder %s39_s12, %s39_s12 }
  0x1a   :  { %p150_p11 = scmp.ne.s32.totalorder %s39_s12, %s149_s30  ;;  %p155_p13 = scmp.lt.s32.totalorder %s149_s30, %s149_s30 }
  0x1c   :  { %p156_p0 = por %p155_p13, %p154_p12 }
  0x1e   :  { %p157_p1 = pnand %p156_p0, %p150_p11 }
  0x20   :  { %160 = shalt.err (!%p157_p1)
}
  0x21   :  { %41 = dma.hbm_to_vmem [thread:$0]  %s232_s1, 256, %s39_s12, [#allocation7]  }
  0x22   :  { %171 = dma.done.wait [#allocation4], 256  }
  0x23   :  { %172 = vsyncadd [#allocation4], 4294967040 }
  0x24   :  { %173 = dma.done.wait [#allocation7], 256  }
  0x25   :  { %174 = vsyncadd [#allocation7], 4294967040  ;;  %v60_v0 = vld [vmem:[#allocation3] sm:$0xff]  ;;  %v61_v1 = vld [vmem:[#allocation3 + $0x8] sm:$0xff]  ;;  %s161_s6 = scalar_lea.hbm %s233_s2, 16 }
  0x26   :  { %v62_v2 = vld [vmem:[#allocation6] sm:$0xff]  ;;  %v63_v3 = vld [vmem:[#allocation6 + $0x8] sm:$0xff]  ;;  %p162_p2 = scmp.ne.s32.totalorder %s233_s2, %s161_s6  ;;  %p165_p3 = scmp.lt.u32.totalorder %s161_s6, %s233_s2 }
  0x27   :  { %v64_v4 = vsub.f32 %v60_v0, %v62_v2  ;;  %v65_v5 = vsub.f32 %v61_v1, %v63_v3 }
  0x28   :  { %p167_p4 = pnand %p165_p3, %p162_p2 }
  0x29   :  { %v66_v6 = vmul.f32 %v64_v4, %v64_v4  ;;  %v67_v7 = vmul.f32 %v65_v5, %v65_v5 }
  0x2b   :  { %v81_v8 = vadd.f32 %v67_v7, %v66_v6 }
  0x2d   :  { %82 = vadd.xlane.f32.xlu0 %v81_v8 }
  0xba   :  { %v83_v9 = vpop.xlane.xlu0 %82 }
  0xbb   :  { %v84_v10 = vrot.slane %v83_v9, 4 }
  0xbd   :  { %v85_v11 = vadd.f32 %v84_v10, %v83_v9 }
  0xbf   :  { %v86_v12 = vrot.slane %v85_v11, 2 }
  0xc1   :  { %v87_v13 = vadd.f32 %v86_v12, %v85_v11 }
  0xc3   :  { %v88_v14 = vrot.slane %v87_v13, 1 }
  0xc5   :  { %v89_v15 = vadd.f32 %v88_v14, %v87_v13 }
  0xc7   :  { %112 = vpush %v89_v15 }
  0xf8   :  { %s113_s1 = spop %112 }
  0xf9   :  { %92 = sst [smem:[#allocation8]] %s113_s1 }
  0xfa   :  { %170 = shalt.err (!%p167_p4)
}
  0xfb   :  { %s179_s11 = smov [#allocation8]  }
  0xfc   :  { %100 = dma.smem_to_hbm %s179_s11, 16, %s233_s2, [#allocation5]  }
  0xfd   :  { %175 = dma.done.wait [#allocation5], 16  }
  0xfe   :  { %176 = vsyncadd [#allocation5], 4294967280 }
  0xff   :  { %104 = sfence }
 0x100   :  { %105 = vsyncpa [#allocation4], 1 }
 0x101   :  { %106 = vsyncpa [#allocation7], 1 }
 0x102   :  { %107 = vsyncpa [#allocation5], 1 }

</bundles_post_ra>
